<compile_context>
chip_gen: v5e
topology: v5e:2x2
jax: 0.10.0
libtpu: 0.0.40
codegen_flags: <defaults>
</compile_context>

<pallas_src>
import math
import functools

import jax
import jax.numpy as jnp
from jax.experimental import pallas as pl
from jax.experimental.pallas import tpu as pltpu

_INV_SQRT2 = 0.7071067811865476
_LN_EPS = 1e-5


# ----------------------------- helpers ---------------------------------------


def _round_up(v, m):
    return (v + m - 1) // m * m


def _physical_vmem_bytes():
    try:
        return int(pltpu.get_tpu_info().vmem_capacity_bytes)
    except Exception:
        return 64 * 1024 * 1024  # conservative: v7x per-TensorCore VMEM


def _choose_k_tile(model_dim, cap=2048):
    """Keep K resident when it fits; otherwise stream it in clean 128-multiples."""
    if model_dim <= cap:
        return model_dim
    for t in (2048, 1024, 512, 256, 128):
        if model_dim % t == 0:
            return t
    return model_dim  # no clean divisor; keep K resident (rare)


def _estimate_vmem(rt, tk, out_p, x_isz, w_isz, k_steps, w_bufs):
    return (
        2 * rt * tk * x_isz            # x tiles (double-buffered)
        + 2 * rt * out_p * x_isz       # output tiles (double-buffered)
        + w_bufs * tk * out_p * w_isz  # weight block(s)
        + 2 * 3 * out_p * 4            # fused bias/gamma/beta
        + (rt * out_p * 4 if k_steps > 1 else 0)  # f32 accumulator scratch
        + 3 * rt * out_p * 4           # f32 epilogue intermediates headroom
    )


# ----------------------------- kernels ---------------------------------------


def _epilogue(h, p, out_dim):
    """h: (rt, out_p) f32 pre-activation (no bias).  p: (3, out_p) f32 params."""
    bias, gamma, beta = p[0:1, :], p[1:2, :], p[2:3, :]
    h = h + bias
    # Exact erf-GELU (matches torch.erf reference); multiply by 1/sqrt(2), no divide.
    h = h * 0.5 * (1.0 + jax.lax.erf(h * _INV_SQRT2))

    out_p = h.shape[-1]
    inv_d = 1.0 / out_dim
    # Padded columns of h are exactly 0 (zero W columns + zero bias, GELU(0)=0),
    # so the plain sum already equals the sum over the true out_dim.
    mu = jnp.sum(h, axis=-1, keepdims=True) * inv_d
    c = h - mu
    if out_p != out_dim:
        lane = jax.lax.broadcasted_iota(jnp.int32, (1, out_p), 1)
        csq = jnp.where(lane < out_dim, c * c, 0.0)
    else:
        csq = c * c
    var = jnp.sum(csq, axis=-1, keepdims=True) * inv_d
    hn = c * jax.lax.rsqrt(var + _LN_EPS)
    # Padded columns: gamma = beta = 0 -> output is 0 there (sliced off outside).
    return hn * gamma + beta


def _fused_kernel(x_ref, w_ref, p_ref, o_ref, *, out_dim):
    # Single K step: weight block resident, no accumulator scratch needed.
    h = jnp.dot(x_ref[...], w_ref[...], preferred_element_type=jnp.float32)
    out = _epilogue(h, p_ref[...].astype(jnp.float32), out_dim)
    o_ref[...] = out.astype(o_ref.dtype)


def _fused_kernel_ksplit(x_ref, w_ref, p_ref, o_ref, acc_ref, *, out_dim):
    # K-tiled: accumulate partial matmuls in f32; epilogue only on the last K step.
    @pl.when(pl.program_id(1) == 0)
    def _():
        acc_ref[...] = jnp.zeros_like(acc_ref)

    acc_ref[...] += jnp.dot(x_ref[...], w_ref[...],
                            preferred_element_type=jnp.float32)

    @pl.when(pl.program_id(1) == pl.num_programs(1) - 1)
    def _():
        out = _epilogue(acc_ref[...], p_ref[...].astype(jnp.float32), out_dim)
        o_ref[...] = out.astype(o_ref.dtype)


# ----------------------------- pallas_call -----------------------------------


@functools.partial(
    jax.jit, static_argnames=("rt", "tk", "out_dim", "single_buffer_consts"))
def _forward_2d(x2, w_p, params, *, rt, tk, out_dim, single_buffer_consts):
    n, model_dim = x2.shape
    out_p = w_p.shape[1]
    k_steps = model_dim // tk
    grid = (pl.cdiv(n, rt), k_steps)

    const_mode = {}
    if single_buffer_consts:
        const_mode = dict(pipeline_mode=pl.Buffered(1))

    x_spec = pl.BlockSpec((rt, tk), lambda i, k: (i, k))
    w_spec = pl.BlockSpec((tk, out_p), lambda i, k: (k, 0),
                          **(const_mode if k_steps == 1 else {}))
    p_spec = pl.BlockSpec((3, out_p), lambda i, k: (0, 0), **const_mode)
    o_spec = pl.BlockSpec((rt, out_p), lambda i, k: (i, 0))

    if k_steps == 1:
        kernel = functools.partial(_fused_kernel, out_dim=out_dim)
        scratch = []
    else:
        kernel = functools.partial(_fused_kernel_ksplit, out_dim=out_dim)
        scratch = [pltpu.VMEM((rt, out_p), jnp.float32)]

    x_isz = jnp.dtype(x2.dtype).itemsize
    w_isz = jnp.dtype(w_p.dtype).itemsize
    w_bufs = 1 if (k_steps == 1 and single_buffer_consts) else 2
    need = _estimate_vmem(rt, tk, out_p, x_isz, w_isz, k_steps, w_bufs)
    phys = _physical_vmem_bytes()
    vmem_limit = int(min(max(need + (8 << 20), 32 << 20), phys - (4 << 20)))

    return pl.pallas_call(
        kernel,
        out_shape=jax.ShapeDtypeStruct((n, out_p), x2.dtype),
        grid_spec=pltpu.PrefetchScalarGridSpec(
            num_scalar_prefetch=0,
            grid=grid,
            in_specs=[x_spec, w_spec, p_spec],
            out_specs=o_spec,
            scratch_shapes=scratch,
        ),
        compiler_params=pltpu.CompilerParams(
            dimension_semantics=("parallel", "arbitrary"),
            vmem_limit_bytes=vmem_limit,
        ),
    )(x2, w_p, params)


def prediction_transform(x, w, b, gamma, beta, *, row_tile=512):
    """x: (batch, seq, model_dim) -> (batch, seq, out_dim).  w: (model_dim, out_dim)."""
    batch, seq, model_dim = x.shape
    out_dim = w.shape[1]
    n = batch * seq

    out_p = _round_up(out_dim, 128)       # lane-dense output (unmasked stores)
    tk = _choose_k_tile(model_dim)
    k_steps = model_dim // tk

    # Row tile: large by default, clamped for tiny inputs, multiple of 8 (sublane).
    rt = _round_up(min(row_tile, _round_up(n, 8)), 8)
    # Give v7x's two TensorCores at least two row-grid steps when possible.
    if pl.cdiv(n, rt) < 2 and n > 8:
        rt = _round_up(pl.cdiv(n, 2), 8)
    # Shrink the row tile if the VMEM estimate exceeds this generation's VMEM.
    budget = _physical_vmem_bytes() - (8 << 20)
    x_isz = jnp.dtype(x.dtype).itemsize
    w_isz = jnp.dtype(w.dtype).itemsize
    while rt > 8 and _estimate_vmem(rt, tk, out_p, x_isz, w_isz, k_steps, 2) > budget:
        rt = max(8, _round_up(rt // 2, 8))

    x2 = x.reshape(n, model_dim)
    if out_p != out_dim:
        pad = out_p - out_dim
        w_p = jnp.pad(w, ((0, 0), (0, pad)))          # one-time, parameter-sized
        params = jnp.stack([jnp.pad(b, (0, pad)),
                            jnp.pad(gamma, (0, pad)),
                            jnp.pad(beta, (0, pad))])
    else:
        w_p = w
        params = jnp.stack([b, gamma, beta])

    try:
        out2 = _forward_2d(x2, w_p, params, rt=rt, tk=tk, out_dim=out_dim,
                           single_buffer_consts=True)
    except Exception:
        # Installed Pallas may not support pipeline_mode=pl.Buffered(1); fall back
        # to default double-buffered constants.
        out2 = _forward_2d(x2, w_p, params, rt=rt, tk=tk, out_dim=out_dim,
                           single_buffer_consts=False)

    if out_p != out_dim:
        out2 = out2[:, :out_dim]
    return out2.reshape(batch, seq, out_dim)


# ----------------------------- reference & demo ------------------------------


def reference(x, w, b, gamma, beta):
    h = jnp.einsum("bsd,de->bse", x.astype(jnp.float32), w.astype(jnp.float32)) + b
    h = h * 0.5 * (1.0 + jax.lax.erf(h / math.sqrt(2.0)))
    mu = jnp.mean(h, axis=-1, keepdims=True)
    var = jnp.mean((h - mu) ** 2, axis=-1, keepdims=True)
    hn = (h - mu) * jax.lax.rsqrt(var + 1e-5)
    return hn * gamma + beta


if __name__ == "__main__":
    key = jax.random.PRNGKey(0)
    batch, seq, model_dim, out_dim = 2, 8, 32, 32

    k1, k2, k3, _, _ = jax.random.split(key, 5)
    x = jax.random.normal(k1, (batch, seq, model_dim), dtype=jnp.float32)

    # Deterministic parameter init (shapes from nn.Linear(model_dim, out_dim) and
    # nn.LayerNorm(out_dim)); stored as (model_dim, out_dim) so the kernel computes
    # x @ W directly (equivalent to torch's x @ weight.T).
    bound = 1.0 / math.sqrt(model_dim)
    w = jax.random.uniform(k2, (model_dim, out_dim), jnp.float32, -bound, bound)
    b = jax.random.uniform(k3, (out_dim,), jnp.float32, -bound, bound)
    gamma = jnp.ones((out_dim,), jnp.float32)
    beta = jnp.zeros((out_dim,), jnp.float32)

    out = prediction_transform(x, w, b, gamma, beta)
    out = jax.block_until_ready(out)

    ref = reference(x, w, b, gamma, beta)
    assert out.shape == (batch, seq, out_dim)
    assert jnp.allclose(out, ref, atol=2e-5, rtol=2e-5), "mismatch vs reference"

    print("KERNEL_OK")
</pallas_src>

<mosaic_0001>
module attributes {stable_mosaic.version = 11 : i64} {
  func.func @_fused_kernel(%arg0: i32, %arg1: i32, %arg2: memref<8x32xf32, #tpu.memory_space<vmem>>, %arg3: memref<32x128xf32, #tpu.memory_space<vmem>>, %arg4: memref<3x128xf32, #tpu.memory_space<vmem>>, %arg5: memref<8x128xf32, #tpu.memory_space<vmem>>) attributes {dimension_semantics = [#tpu.dimension_semantics<parallel>, #tpu.dimension_semantics<arbitrary>], iteration_bounds = array<i64: 2, 1>, scalar_prefetch = 0 : i64, scratch_operands = 0 : i64, tpu.core_type = #tpu.core_type<tc>, window_params = [{transform_indices = @transform_0, window_bounds = array<i64: 8, 32>}, {pipeline_mode = #tpu.pipeline_mode<synchronous>, transform_indices = @transform_1, window_bounds = array<i64: 32, 128>}, {pipeline_mode = #tpu.pipeline_mode<synchronous>, transform_indices = @transform_2, window_bounds = array<i64: 3, 128>}, {transform_indices = @transform_3, window_bounds = array<i64: 8, 128>}]} {
    %c0 = arith.constant 0 : index
    %c0_0 = arith.constant 0 : index
    %0 = vector.load %arg2[%c0, %c0_0] : memref<8x32xf32, #tpu.memory_space<vmem>>, vector<8x32xf32>
    %c0_1 = arith.constant 0 : index
    %c0_2 = arith.constant 0 : index
    %1 = vector.load %arg3[%c0_1, %c0_2] : memref<32x128xf32, #tpu.memory_space<vmem>>, vector<32x128xf32>
    %cst = arith.constant dense<0.000000e+00> : vector<8x128xf32>
    %2 = tpu.matmul %0, %1, %cst {dimension_numbers = #tpu.dot_dimension_numbers<[1], [0], [0], [1], [0, 0, 1, 1], [], []>} : vector<8x32xf32>, vector<32x128xf32>, vector<8x128xf32> -> vector<8x128xf32>
    %c0_3 = arith.constant 0 : index
    %c0_4 = arith.constant 0 : index
    %3 = vector.load %arg4[%c0_3, %c0_4] : memref<3x128xf32, #tpu.memory_space<vmem>>, vector<3x128xf32>
    %4 = vector.extract_strided_slice %3 {offsets = [0, 0], sizes = [1, 128], strides = [1, 1]} : vector<3x128xf32> to vector<1x128xf32>
    %5 = vector.extract_strided_slice %3 {offsets = [1, 0], sizes = [1, 128], strides = [1, 1]} : vector<3x128xf32> to vector<1x128xf32>
    %6 = vector.extract_strided_slice %3 {offsets = [2, 0], sizes = [1, 128], strides = [1, 1]} : vector<3x128xf32> to vector<1x128xf32>
    %7 = vector.broadcast %4 : vector<1x128xf32> to vector<8x128xf32>
    %8 = arith.addf %2, %7 : vector<8x128xf32>
    %cst_5 = arith.constant 5.000000e-01 : f32
    %9 = vector.broadcast %cst_5 : f32 to vector<8x128xf32>
    %10 = arith.mulf %8, %9 : vector<8x128xf32>
    %cst_6 = arith.constant 0.707106769 : f32
    %11 = vector.broadcast %cst_6 : f32 to vector<8x128xf32>
    %12 = arith.mulf %8, %11 : vector<8x128xf32>
    %13 = math.erf %12 : vector<8x128xf32>
    %cst_7 = arith.constant 1.000000e+00 : f32
    %14 = vector.broadcast %cst_7 : f32 to vector<8x128xf32>
    %15 = arith.addf %14, %13 : vector<8x128xf32>
    %16 = arith.mulf %10, %15 : vector<8x128xf32>
    %cst_8 = arith.constant dense<0.000000e+00> : vector<8xf32>
    %17 = vector.multi_reduction <add>, %16, %cst_8 [1] : vector<8x128xf32> to vector<8xf32>
    %18 = vector.shape_cast %17 : vector<8xf32> to vector<8x1xf32>
    %cst_9 = arith.constant 3.125000e-02 : f32
    %19 = vector.broadcast %cst_9 : f32 to vector<8x1xf32>
    %20 = arith.mulf %18, %19 : vector<8x1xf32>
    %21 = vector.broadcast %20 : vector<8x1xf32> to vector<8x128xf32>
    %22 = arith.subf %16, %21 : vector<8x128xf32>
    %23 = tpu.iota {dimensions = array<i32: 1>} : vector<1x128xi32>
    %c32_i32 = arith.constant 32 : i32
    %24 = vector.broadcast %c32_i32 : i32 to vector<1x128xi32>
    %25 = arith.cmpi slt, %23, %24 : vector<1x128xi32>
    %26 = arith.mulf %22, %22 : vector<8x128xf32>
    %cst_10 = arith.constant 0.000000e+00 : f32
    %27 = vector.shape_cast %25 : vector<1x128xi1> to vector<1x128xi1>
    %28 = vector.broadcast %27 : vector<1x128xi1> to vector<8x128xi1>
    %29 = vector.broadcast %cst_10 : f32 to vector<8x128xf32>
    %30 = arith.select %28, %26, %29 : vector<8x128xi1>, vector<8x128xf32>
    %cst_11 = arith.constant dense<0.000000e+00> : vector<8xf32>
    %31 = vector.multi_reduction <add>, %30, %cst_11 [1] : vector<8x128xf32> to vector<8xf32>
    %32 = vector.shape_cast %31 : vector<8xf32> to vector<8x1xf32>
    %cst_12 = arith.constant 3.125000e-02 : f32
    %33 = vector.broadcast %cst_12 : f32 to vector<8x1xf32>
    %34 = arith.mulf %32, %33 : vector<8x1xf32>
    %cst_13 = arith.constant 9.99999974E-6 : f32
    %35 = vector.broadcast %cst_13 : f32 to vector<8x1xf32>
    %36 = arith.addf %34, %35 : vector<8x1xf32>
    %37 = math.rsqrt %36 : vector<8x1xf32>
    %38 = vector.broadcast %37 : vector<8x1xf32> to vector<8x128xf32>
    %39 = arith.mulf %22, %38 : vector<8x128xf32>
    %40 = vector.broadcast %5 : vector<1x128xf32> to vector<8x128xf32>
    %41 = arith.mulf %39, %40 : vector<8x128xf32>
    %42 = vector.broadcast %6 : vector<1x128xf32> to vector<8x128xf32>
    %43 = arith.addf %41, %42 : vector<8x128xf32>
    %c0_14 = arith.constant 0 : index
    %c0_15 = arith.constant 0 : index
    %44 = vector.load %arg5[%c0_14, %c0_15] : memref<8x128xf32, #tpu.memory_space<vmem>>, vector<8x128xf32>
    tpu.vector_store %arg5[%c0_14, %c0_15], %43 {strides = array<i32>} : memref<8x128xf32, #tpu.memory_space<vmem>>, vector<8x128xf32>,
    return
  }
  func.func @transform_0(%arg0: i32, %arg1: i32) -> (i32, i32) {
    %c0_i32 = arith.constant 0 : i32
    return %arg0, %arg1 : i32, i32
  }
  func.func @transform_1(%arg0: i32, %arg1: i32) -> (i32, i32) {
    %c0_i32 = arith.constant 0 : i32
    %c0_i32_0 = arith.constant 0 : i32
    return %arg1, %c0_i32 : i32, i32
  }
  func.func @transform_2(%arg0: i32, %arg1: i32) -> (i32, i32) {
    %c0_i32 = arith.constant 0 : i32
    %c0_i32_0 = arith.constant 0 : i32
    %c0_i32_1 = arith.constant 0 : i32
    return %c0_i32, %c0_i32_0 : i32, i32
  }
  func.func @transform_3(%arg0: i32, %arg1: i32) -> (i32, i32) {
    %c0_i32 = arith.constant 0 : i32
    %c0_i32_0 = arith.constant 0 : i32
    return %arg0, %c0_i32 : i32, i32
  }
}

module attributes {stable_mosaic.version = 11 : i64} {
  func.func @_fused_kernel(%arg0: i32, %arg1: i32, %arg2: memref<8x32xf32, #tpu.memory_space<vmem>>, %arg3: memref<32x128xf32, #tpu.memory_space<vmem>>, %arg4: memref<3x128xf32, #tpu.memory_space<vmem>>, %arg5: memref<8x128xf32, #tpu.memory_space<vmem>>) attributes {dimension_semantics = [#tpu.dimension_semantics<parallel>, #tpu.dimension_semantics<arbitrary>], iteration_bounds = array<i64: 2, 1>, scalar_prefetch = 0 : i64, scratch_operands = 0 : i64, tpu.core_type = #tpu.core_type<tc>, window_params = [{transform_indices = @transform_0, window_bounds = array<i64: 8, 32>}, {transform_indices = @transform_1, window_bounds = array<i64: 32, 128>}, {pipeline_mode = #tpu.pipeline_mode<synchronous>, transform_indices = @transform_2, window_bounds = array<i64: 3, 128>}, {transform_indices = @transform_3, window_bounds = array<i64: 8, 128>}]} {
    %c0 = arith.constant 0 : index
    %c0_0 = arith.constant 0 : index
    %0 = vector.load %arg2[%c0, %c0_0] : memref<8x32xf32, #tpu.memory_space<vmem>>, vector<8x32xf32>
    %c0_1 = arith.constant 0 : index
    %c0_2 = arith.constant 0 : index
    %1 = vector.load %arg3[%c0_1, %c0_2] : memref<32x128xf32, #tpu.memory_space<vmem>>, vector<32x128xf32>
    %cst = arith.constant dense<0.000000e+00> : vector<8x128xf32>
    %2 = tpu.matmul %0, %1, %cst {dimension_numbers = #tpu.dot_dimension_numbers<[1], [0], [0], [1], [0, 0, 1, 1], [], []>} : vector<8x32xf32>, vector<32x128xf32>, vector<8x128xf32> -> vector<8x128xf32>
    %c0_3 = arith.constant 0 : index
    %c0_4 = arith.constant 0 : index
    %3 = vector.load %arg4[%c0_3, %c0_4] : memref<3x128xf32, #tpu.memory_space<vmem>>, vector<3x128xf32>
    %4 = vector.extract_strided_slice %3 {offsets = [0, 0], sizes = [1, 128], strides = [1, 1]} : vector<3x128xf32> to vector<1x128xf32>
    %5 = vector.extract_strided_slice %3 {offsets = [1, 0], sizes = [1, 128], strides = [1, 1]} : vector<3x128xf32> to vector<1x128xf32>
    %6 = vector.extract_strided_slice %3 {offsets = [2, 0], sizes = [1, 128], strides = [1, 1]} : vector<3x128xf32> to vector<1x128xf32>
    %7 = vector.broadcast %4 : vector<1x128xf32> to vector<8x128xf32>
    %8 = arith.addf %2, %7 : vector<8x128xf32>
    %cst_5 = arith.constant 5.000000e-01 : f32
    %9 = vector.broadcast %cst_5 : f32 to vector<8x128xf32>
    %10 = arith.mulf %8, %9 : vector<8x128xf32>
    %cst_6 = arith.constant 0.707106769 : f32
    %11 = vector.broadcast %cst_6 : f32 to vector<8x128xf32>
    %12 = arith.mulf %8, %11 : vector<8x128xf32>
    %13 = math.erf %12 : vector<8x128xf32>
    %cst_7 = arith.constant 1.000000e+00 : f32
    %14 = vector.broadcast %cst_7 : f32 to vector<8x128xf32>
    %15 = arith.addf %14, %13 : vector<8x128xf32>
    %16 = arith.mulf %10, %15 : vector<8x128xf32>
    %cst_8 = arith.constant dense<0.000000e+00> : vector<8xf32>
    %17 = vector.multi_reduction <add>, %16, %cst_8 [1] : vector<8x128xf32> to vector<8xf32>
    %18 = vector.shape_cast %17 : vector<8xf32> to vector<8x1xf32>
    %cst_9 = arith.constant 3.125000e-02 : f32
    %19 = vector.broadcast %cst_9 : f32 to vector<8x1xf32>
    %20 = arith.mulf %18, %19 : vector<8x1xf32>
    %21 = vector.broadcast %20 : vector<8x1xf32> to vector<8x128xf32>
    %22 = arith.subf %16, %21 : vector<8x128xf32>
    %23 = tpu.iota {dimensions = array<i32: 1>} : vector<1x128xi32>
    %c32_i32 = arith.constant 32 : i32
    %24 = vector.broadcast %c32_i32 : i32 to vector<1x128xi32>
    %25 = arith.cmpi slt, %23, %24 : vector<1x128xi32>
    %26 = arith.mulf %22, %22 : vector<8x128xf32>
    %cst_10 = arith.constant 0.000000e+00 : f32
    %27 = vector.shape_cast %25 : vector<1x128xi1> to vector<1x128xi1>
    %28 = vector.broadcast %27 : vector<1x128xi1> to vector<8x128xi1>
    %29 = vector.broadcast %cst_10 : f32 to vector<8x128xf32>
    %30 = arith.select %28, %26, %29 : vector<8x128xi1>, vector<8x128xf32>
    %cst_11 = arith.constant dense<0.000000e+00> : vector<8xf32>
    %31 = vector.multi_reduction <add>, %30, %cst_11 [1] : vector<8x128xf32> to vector<8xf32>
    %32 = vector.shape_cast %31 : vector<8xf32> to vector<8x1xf32>
    %cst_12 = arith.constant 3.125000e-02 : f32
    %33 = vector.broadcast %cst_12 : f32 to vector<8x1xf32>
    %34 = arith.mulf %32, %33 : vector<8x1xf32>
    %cst_13 = arith.constant 9.99999974E-6 : f32
    %35 = vector.broadcast %cst_13 : f32 to vector<8x1xf32>
    %36 = arith.addf %34, %35 : vector<8x1xf32>
    %37 = math.rsqrt %36 : vector<8x1xf32>
    %38 = vector.broadcast %37 : vector<8x1xf32> to vector<8x128xf32>
    %39 = arith.mulf %22, %38 : vector<8x128xf32>
    %40 = vector.broadcast %5 : vector<1x128xf32> to vector<8x128xf32>
    %41 = arith.mulf %39, %40 : vector<8x128xf32>
    %42 = vector.broadcast %6 : vector<1x128xf32> to vector<8x128xf32>
    %43 = arith.addf %41, %42 : vector<8x128xf32>
    %c0_14 = arith.constant 0 : index
    %c0_15 = arith.constant 0 : index
    %44 = vector.load %arg5[%c0_14, %c0_15] : memref<8x128xf32, #tpu.memory_space<vmem>>, vector<8x128xf32>
    tpu.vector_store %arg5[%c0_14, %c0_15], %43 {strides = array<i32>} : memref<8x128xf32, #tpu.memory_space<vmem>>, vector<8x128xf32>,
    return
  }
  func.func @transform_0(%arg0: i32, %arg1: i32) -> (i32, i32) {
    %c0_i32 = arith.constant 0 : i32
    return %arg0, %arg1 : i32, i32
  }
  func.func @transform_1(%arg0: i32, %arg1: i32) -> (i32, i32) {
    %c0_i32 = arith.constant 0 : i32
    %c0_i32_0 = arith.constant 0 : i32
    return %arg1, %c0_i32 : i32, i32
  }
  func.func @transform_2(%arg0: i32, %arg1: i32) -> (i32, i32) {
    %c0_i32 = arith.constant 0 : i32
    %c0_i32_0 = arith.constant 0 : i32
    %c0_i32_1 = arith.constant 0 : i32
    return %c0_i32, %c0_i32_0 : i32, i32
  }
  func.func @transform_3(%arg0: i32, %arg1: i32) -> (i32, i32) {
    %c0_i32 = arith.constant 0 : i32
    %c0_i32_0 = arith.constant 0 : i32
    return %arg0, %c0_i32 : i32, i32
  }
}

</mosaic_0001>

<bundles_post_ra>
// kernel: _forward_2d.1
= control target key start
LH: loop header
LB: loop body
LE: loop exit
PB: predicated region body
PF: predicated region fallthrough
CT: control target
= control target key end

     0   :  { %8 = vsyncpa [#allocation3], 0  ;;  %s928_s0 = inlined_call_operand.hbm [shape: f32[16,32], index: 0, kind: input, shape index: {}]   ;;  %s929_s1 = inlined_call_operand.hbm [shape: f32[32,128], index: 1, kind: input, shape index: {}]   ;;  %s930_s2 = inlined_call_operand.hbm [shape: f32[3,128], index: 2, kind: input, shape index: {}]   ;;  %s931_s3 = inlined_call_operand.hbm [shape: f32[16,128], index: 3, kind: output, shape index: {}]  }
   0x1   :  { %10 = vsyncpa [#allocation3 + $0x1], 0 }
   0x2   :  { %11 = vsyncpa [#allocation6], 0 }
   0x3   :  { %12 = vsyncpa [#allocation4], 0 }
   0x4   :  { %14 = vsyncpa [#allocation4 + $0x1], 0  ;;  %s775_s12 = smov 0   ;;  %s777_s13 = smov 0  }
   0x5   :  { %s779_s14 = smov 0   ;;  %s781_s15 = smov 0  }
   0x6   :  { %s783_s16 = smov 0   ;;  %s785_s17 = smov 0  }
   0x7 LB: > { %s465_s18 = sadd.s32 4294967295, %s749_s17   ;;  %p467_p0 = scmp.ge.s32.totalorder %s749_s17, 1  ;;  %s749_s17 = sphi %s785_s17, %s20_s17   ;;  %s745_s16 = sphi %s783_s16, %s941_s16   ;;  %s741_s15 = sphi %s781_s15, %s940_s15   ;;  %s737_s14 = sphi %s779_s14, %s939_s14   ;;  %s733_s13 = sphi %s777_s13, %s938_s13   ;;  %s729_s12 = sphi %s775_s12, %s937_s12  }
   0x8   : > { %p809_p1 = scmp.eq.s32.totalorder %s465_s18, 0  ;;  %p138_p2 = scmp.lt.s32.totalorder %s749_s17, 3 }
   0x9   : > { %s152_s22 = sshll.u32 %s929_s1, 4  ;;  %s751_s24 = smov [#allocation5]   ;;  %s153_s22 = int_to_ptr.hbm [resolvable:$true] %s152_s22 }
   0xa   : > { %p817_p3 = pnand %p467_p0, %p138_p2  ;;  %s154_s25 = sshll.u32 %s751_s24, 4  ;;  %s155_s25 = int_to_ptr.vmem [resolvable:$true] %s154_s25 }
   0xb   : > { %p470_p6 = scmp.ge.s32.totalorder %s749_s17, 2  ;;  %s167_s28 = sshll.u32 %s930_s2, 4  ;;  %s168_s28 = int_to_ptr.hbm [resolvable:$true] %s167_s28 }
   0xc   : > { %p496_p4 = pneg %p817_p3  ;;  %s752_s29 = smov 128  }
   0xd   : > { %s753_s30 = smov 8   ;;  %s754_s4 = smov [#allocation7]  }
   0xe   : > { %p497_p5 = pnand %p496_p4, %p809_p1  ;;  %s169_s5 = sshll.u32 %s754_s4, 4  ;;  %s170_s5 = int_to_ptr.vmem [resolvable:$true] %s169_s5 }
   0xf   : > { %s32_s6 = sadd.s32 1, %s745_s16  ;;  %s466_s7 = sadd.s32 4294967294, %s749_s17  }
  0x10   : > { %499 = dma.hbm_to_vmem [thread:$0]  (!%p497_p5), %s153_s22, 512, %s155_s25, [#allocation6], %s752_s29, %s752_s29, %s753_s30  }
  0x11   : > { %502 = dma.hbm_to_vmem [thread:$0]  (!%p497_p5), %s168_s28, 64, %s170_s5, [#allocation6]  }
  0x12   : > { %p34_p7 = scmp.ge.s32.totalorder %s32_s6, 2  ;;  %s41_s8 = sadd.s32 1, %s737_s14 }
  0x13   : > { %p48_p8 = scmp.ne.s32.totalorder %s737_s14, %s733_s13  ;;  %p49_p9 = scmp.eq.s32.totalorder %s749_s17, 0 }
  0x14   : > { %s943_s6 = smov (%p34_p7, %s32_s6), 0  ;;  %p54_p10 = scmp.ne.s32.totalorder %s733_s13, %s729_s12 }
  0x15   : > { %s36_s9 = ssub.s32 %s745_s16, %s943_s6  ;;  %p125_p11 = scmp.eq.s32.totalorder %s465_s18, 1 }
  0x16   : > { %p39_p12 = scmp.eq.s32.totalorder %s36_s9, 0  ;;  %p845_p13 = por %p809_p1, %p54_p10 }
  0x17   : > { %p849_p0 = por %p125_p11, %p48_p8  ;;  %p131_p2 = scmp.eq.s32.totalorder %s466_s7, 1 }
  0x18   : > { %s854_s20 = scalar_select %p39_p12, %s737_s14, %s41_s8  }
  0x19   : > { %p50_p4 = por %p49_p9, %p48_p8  ;;  %p856_p5 = por %p131_p2, %p54_p10 }
  0x1a   : > { %s180_s22 = sand.u32 1, %s737_s14   ;;  %s472_s18 = sshll.u32 %s745_s16, 3 }
  0x1b   : > { %p513_p7 = scmp.lt.s32.totalorder %s749_s17, 2  ;;  %s471_s24 = sshll.u32 %s180_s22, 3 }
  0x1c   : > { %s189_s27 = scalar_lea.hbm %s928_s0, %s472_s18  ;;  %s184_s29 = scalar_lea.vmem [#allocation2], %s471_s24 }
  0x1d   : > { %s191_s28 = sshll.u32 %s189_s27, 4  ;;  %s193_s30 = sshll.u32 %s184_s29, 4  ;;  %s192_s28 = int_to_ptr.hbm [resolvable:$true] %s191_s28  ;;  %s194_s30 = int_to_ptr.vmem [resolvable:$true] %s193_s30 }
  0x1e   : > { %p504_p11 = pnand %p513_p7, %p50_p4  ;;  %s181_s4 = scalar_lea.sflag [#allocation3], %s180_s22 }
  0x1f   : > { %202 = sbr.rel (%p817_p3) target bundleno = 496 (0x1f0), region = 32  ;;  %s869_s5 = sand.u32 (!%p817_p3), 1, %s733_s13  }
  0x20   : > { %506 = dma.hbm_to_vmem [thread:$0]  (!%p504_p11), %s192_s28, 128, %s194_s30, %s181_s4  }
  0x21   : > { %s474_s7 = sshll.u32 (!%p817_p3), %s869_s5, 3  ;;  %s205_s8 = scalar_lea.sflag (!%p817_p3), [#allocation3], %s869_s5 }
  0x22   : > { %s208_s9 = scalar_lea.vmem (!%p817_p3), [#allocation2], %s474_s7 }
  0x24   : > { %716 = dma.done.wait (%p845_p13), %s205_s8, 128  }
  0x25   : > { %718 = vsyncadd (%p845_p13), %s205_s8, 4294967168 }
  0x26   : > { %720 = dma.done.wait (%p809_p1), [#allocation6], 576  }
  0x27   : > { %722 = vsyncadd (%p809_p1), [#allocation6], 4294966720  ;;  %v247_v0 = vld [vmem:[#allocation5 + $0x18] sm:$0xff]  ;;  %v246_v1 = vld [vmem:[#allocation5 + $0x10] sm:$0xff]  ;;  %vm250_vm0 = vcmask 261120   ;;  %v322_v48 = vlaneseq  ;;  %s481_s19 = sshll.u32 %s741_s15, 3 }
  0x28   : > { %266 = vmatpush.msra.mxu0 %v247_v0  ;;  %v245_v2 = vld [vmem:[#allocation5 + $0x8] sm:$0xff]  ;;  %v244_v3 = vld [vmem:[#allocation5] sm:$0xff]  ;;  %v243_v4 = vld [vmem:[%s208_s9] sm:$0xff]  ;;  %s360_s22 = scalar_lea.hbm %s931_s3, %s481_s19  ;;  %s241_s18 = scalar_lea.vmem [#allocation8], %s474_s7 }
  0x29   : > { %v883_v5 = vld [vmem:[#allocation7] sm:$0x7]  ;;  %v323_v50 = vand.u32 127, %v322_v48  ;;  %s362_s24 = sshll.u32 %s241_s18, 4  ;;  %s364_s25 = sshll.u32 %s360_s22, 4  ;;  %s363_s24 = int_to_ptr.vmem [resolvable:$true] %s362_s24  ;;  %s365_s25 = int_to_ptr.hbm [resolvable:$true] %s364_s25 }
  0x2a   : > { %267 = vmatpush.msra.mxu0 %v246_v1  ;;  %v249_v6 = vperm.slane %v883_v5, 0  ;;  %v344_v0 = vperm.slane %v883_v5, 1  ;;  %s350_s15 = scalar_lea.sflag [#allocation4], %s869_s5  ;;  %s677_s26 = sshra.s32 %s365_s25, 4  ;;  %s678_s26 = int_to_ptr.hbm [resolvable:$true] %s677_s26 }
  0x2b   : > { %vm324_vm5 = vcmp.lt.s32.totalorder %v323_v50, 32  ;;  %s679_s27 = scalar_lea.hbm %s678_s26, 8  ;;  %s683_s30 = scalar_lea.hbm %s931_s3, 16 }
  0x2c   : > { %268 = vmatpush.msra.mxu0 %v245_v2  ;;  %v346_v2 = vperm.slane %v883_v5, 2  ;;  %p680_p1 = scmp.ne.s32.totalorder %s678_s26, %s679_s27  ;;  %p684_p9 = scmp.lt.s32.totalorder %s678_s26, %s931_s3 }
  0x2d   : > { %p685_p10 = scmp.lt.s32.totalorder %s683_s30, %s679_s27 }
  0x2e   : > { %269 = vmatpush.msra.mxu0 %v244_v3  ;;  %p681_p3 = pnand %p680_p1, %p849_p0 }
  0x2f   : > { %478 = vmatmul.msk.f32.vlgmr.msra.gmra.mxu0 %vm250_vm0, %v243_v4  ;;  %p686_p12 = por %p685_p10, %p684_p9 }
  0x30   : > { %p682_p8 = pneg %p681_p3 }
  0x32   : > { %p687_p13 = pnand %p686_p12, %p682_p8 }
  0xac   : > { %v271_v7 = vpop.f32.mrf.mxu0 }
  0xad   : > { %v272_v8 = vadd.f32 %v271_v7, %v249_v6 }
  0xaf   : > { %v275_v9 = vmul.f32 0.70710677, %v272_v8  ;;  %v274_v45 = vmul.f32 0.5, %v272_v8 }
  0xb1   : > { %v276_v10 = vmul.f32 %v275_v9, %v275_v9 }
  0xb3   : > { %v277_v11 = vmin.f32 %v276_v10, 16.0 }
  0xb5   : > { %v278_v12 = vmul.f32 2.1237322e-06, %v277_v11  ;;  %v289_v13 = vmul.f32 3.8918573e-05, %v277_v11 }
  0xb7   : > { %v279_v14 = vadd.f32 0.00028619796, %v278_v12  ;;  %v290_v15 = vadd.f32 0.001143296, %v289_v13 }
  0xb9   : > { %v280_v16 = vmul.f32 %v279_v14, %v277_v11  ;;  %v291_v17 = vmul.f32 %v290_v15, %v277_v11 }
  0xbb   : > { %v292_v18 = vadd.f32 0.014752088, %v291_v17  ;;  %v281_v19 = vadd.f32 0.0036580483, %v280_v16 }
  0xbd   : > { %v293_v20 = vmul.f32 %v292_v18, %v277_v11  ;;  %v282_v22 = vmul.f32 %v281_v19, %v277_v11 }
  0xbf   : > { %v294_v21 = vadd.f32 0.112945676, %v293_v20  ;;  %v283_v25 = vadd.f32 0.05243302, %v282_v22 }
  0xc1   : > { %v295_v23 = vmul.f32 %v294_v21, %v277_v11  ;;  %v284_v28 = vmul.f32 %v283_v25, %v277_v11 }
  0xc3   : > { %v296_v24 = vadd.f32 0.4994258, %v295_v23  ;;  %v285_v29 = vadd.f32 0.18741608, %v284_v28 }
  0xc5   : > { %v297_v26 = vmul.f32 %v296_v24, %v277_v11  ;;  %v286_v31 = vmul.f32 %v285_v29, %v277_v11 }
  0xc7   : > { %v298_v27 = vadd.f32 1.0, %v297_v26  ;;  %v287_v35 = vadd.f32 1.1283791, %v286_v31 }
  0xc9   : > { %569 = vrcp.f32 %v298_v27  ;;  %v310_v34 = vand.u32 2147483648, %v298_v27  ;;  %v308_v37 = vand.u32 2147483647, %v298_v27  ;;  %vm304_vm2 = vweird.f32 %v298_v27 }
  0xca   : > { %v288_v40 = vmul.f32 %v287_v35, %v275_v9 }
  0xcb   : > { %v311_v39 = vor.u32 1.1754944e-38, %v310_v34  ;;  %vm309_vm4 = vcmp.eq.f32.partialorder %v308_v37, 8.507059e+37 }
  0xcf   : > { %v570_v30 = vpop.eup %569 }
  0xd0   : > { %v300_v32 = vmul.f32 %v570_v30, %v298_v27  ;;  %vm305_vm1 = vweird.f32 %v570_v30 }
  0xd1   : > { %vm306_vm3 = vmor %vm304_vm2, %vm305_vm1 }
  0xd2   : > { %v301_v33 = vsub.f32 1.0, %v300_v32 }
  0xd4   : > { %v302_v36 = vmul.f32 %v570_v30, %v301_v33 }
  0xd6   : > { %v303_v38 = vadd.f32 %v570_v30, %v302_v36 }
  0xd8   : > { %v307_v41 = vsel %vm306_vm3, %v570_v30, %v303_v38 }
  0xd9   : > { %v312_v42 = vsel %vm309_vm4, %v311_v39, %v307_v41 }
  0xda   : > { %v313_v43 = vmul.f32 %v312_v42, %v288_v40 }
  0xdc   : > { %v479_v44 = vclamps-f32 %v313_v43, 1.0 }
  0xde   : > { %v316_v46 = vadd.f32 1.0, %v479_v44 }
  0xe0   : > { %v317_v47 = vmul.f32 %v316_v46, %v274_v45 }
  0xe2   : > { %318 = vadd.xlane.f32.xlu0 %v317_v47 }
 0x155   : > { %v319_v49 = vpop.xlane.xlu0 %318 }
 0x156   : > { %v320_v51 = vmul.f32 0.03125, %v319_v49 }
 0x158   : > { %v321_v52 = vsub.f32 %v317_v47, %v320_v51 }
 0x15a   : > { %v325_v53 = vmul.f32 %v321_v52, %v321_v52 }
 0x15c   : > { %v328_v54 = vsel %vm324_vm5, %v325_v53, 0.0 }
 0x15d   : > { %329 = vadd.xlane.f32.xlu0 %v328_v54 }
 0x1d0   : > { %v330_v55 = vpop.xlane.xlu0 %329 }
 0x1d1   : > { %v331_v56 = vmul.f32 0.03125, %v330_v55 }
 0x1d3   : > { %v332_v57 = vadd.f32 1e-05, %v331_v56 }
 0x1d5   : > { %571 = vrsqrt.f32 %v332_v57  ;;  %vm339_vm7 = vweird.f32 %v332_v57 }
 0x1db   : > { %v572_v58 = vpop.eup %571 }
 0x1dc   : > { %v334_v59 = vmul.f32 %v572_v58, %v332_v57  ;;  %vm340_vm6 = vweird.f32 %v572_v58 }
 0x1dd   : > { %vm341_vm8 = vmor %vm339_vm7, %vm340_vm6 }
 0x1de   : > { %v335_v60 = vmul.f32 %v572_v58, %v334_v59 }
 0x1e0   : > { %v336_v61 = vmul.f32 0.5, %v335_v60 }
 0x1e2   : > { %v337_v62 = vsub.f32 1.5, %v336_v61 }
 0x1e4   : > { %v338_v63 = vmul.f32 %v572_v58, %v337_v62 }
 0x1e6   : > { %v342_v1 = vsel %vm341_vm8, %v572_v58, %v338_v63 }
 0x1e7   : > { %v343_v3 = vmul.f32 %v342_v1, %v321_v52 }
 0x1e9   : > { %v345_v4 = vmul.f32 %v344_v0, %v343_v3 }
 0x1eb   : > { %v347_v6 = vadd.f32 %v346_v2, %v345_v4 }
 0x1ed   : > { %348 = vst [vmem:[%s241_s18] sm:$0xff] %v347_v6 }
 0x1ee   : > { %690 = shalt.err (!%p687_p13)
}
 0x1ef   : > { %494 = dma.vmem_to_hbm [thread:$0]  (%p849_p0), %s363_s24, 128, %s365_s25, %s350_s15  }
 0x1f0 PF: > { %s376_s5 = sand.u32 1, %s729_s12   ;;  %p508_p2 = pnand %p470_p6, %p856_p5 }
 0x1f1   : > { %s377_s8 = scalar_lea.sflag [#allocation4], %s376_s5 }
 0x1f2   : > { %p509_p4 = pneg %p508_p2 }
 0x1f4   : > { %724 = dma.done.wait (%p509_p4), %s377_s8, 128  }
 0x1f5   : > { %726 = vsyncadd (%p509_p4), %s377_s8, 4294967168  ;;  %s20_s17 = sadd.s32 1, %s749_s17   ;;  %s937_s12 = smov %s733_s13 }
 0x1f6   : > { %p17_p7 = scmp.ge.s32.totalorder %s20_s17, 4   ;;  %s938_s13 = smov %s737_s14 }
 0x1f7   : > { %s939_s14 = smov %s854_s20  ;;  %s940_s15 = smov %s745_s16 }
 0x1f8   : > { %s941_s16 = smov %s943_s6  ;;  %19 = sbr.rel (!%p17_p7) target bundleno = 7 (0x7), region = 86 }
 0x1fd   :  { %383 = vsyncpa [#allocation3], 1 }
 0x1fe   :  { %385 = vsyncpa [#allocation3 + $0x1], 1 }
 0x1ff   :  { %386 = vsyncpa [#allocation6], 1 }
 0x200   :  { %387 = vsyncpa [#allocation4], 1 }
 0x201   :  { %389 = vsyncpa [#allocation4 + $0x1], 1 }

// kernel: _forward_2d.1
= control target key start
LH: loop header
LB: loop body
LE: loop exit
PB: predicated region body
PF: predicated region fallthrough
CT: control target
= control target key end

     0   :  { %8 = vsyncpa [#allocation3], 0  ;;  %s928_s0 = inlined_call_operand.hbm [shape: f32[16,32], index: 0, kind: input, shape index: {}]   ;;  %s929_s1 = inlined_call_operand.hbm [shape: f32[32,128], index: 1, kind: input, shape index: {}]   ;;  %s930_s2 = inlined_call_operand.hbm [shape: f32[3,128], index: 2, kind: input, shape index: {}]   ;;  %s931_s3 = inlined_call_operand.hbm [shape: f32[16,128], index: 3, kind: output, shape index: {}]  }
   0x1   :  { %10 = vsyncpa [#allocation3 + $0x1], 0 }
   0x2   :  { %11 = vsyncpa [#allocation6], 0 }
   0x3   :  { %12 = vsyncpa [#allocation4], 0 }
   0x4   :  { %14 = vsyncpa [#allocation4 + $0x1], 0  ;;  %s775_s12 = smov 0   ;;  %s777_s13 = smov 0  }
   0x5   :  { %s779_s14 = smov 0   ;;  %s781_s15 = smov 0  }
   0x6   :  { %s783_s16 = smov 0   ;;  %s785_s17 = smov 0  }
   0x7 LB: > { %s465_s18 = sadd.s32 4294967295, %s749_s17   ;;  %p467_p0 = scmp.ge.s32.totalorder %s749_s17, 1  ;;  %s749_s17 = sphi %s785_s17, %s20_s17   ;;  %s745_s16 = sphi %s783_s16, %s941_s16   ;;  %s741_s15 = sphi %s781_s15, %s940_s15   ;;  %s737_s14 = sphi %s779_s14, %s939_s14   ;;  %s733_s13 = sphi %s777_s13, %s938_s13   ;;  %s729_s12 = sphi %s775_s12, %s937_s12  }
   0x8   : > { %p809_p1 = scmp.eq.s32.totalorder %s465_s18, 0  ;;  %p138_p2 = scmp.lt.s32.totalorder %s749_s17, 3 }
   0x9   : > { %s152_s22 = sshll.u32 %s929_s1, 4  ;;  %s751_s24 = smov [#allocation5]   ;;  %s153_s22 = int_to_ptr.hbm [resolvable:$true] %s152_s22 }
   0xa   : > { %p817_p3 = pnand %p467_p0, %p138_p2  ;;  %s154_s25 = sshll.u32 %s751_s24, 4  ;;  %s155_s25 = int_to_ptr.vmem [resolvable:$true] %s154_s25 }
   0xb   : > { %p470_p6 = scmp.ge.s32.totalorder %s749_s17, 2  ;;  %s167_s28 = sshll.u32 %s930_s2, 4  ;;  %s168_s28 = int_to_ptr.hbm [resolvable:$true] %s167_s28 }
   0xc   : > { %p496_p4 = pneg %p817_p3  ;;  %s752_s29 = smov 128  }
   0xd   : > { %s753_s30 = smov 8   ;;  %s754_s4 = smov [#allocation7]  }
   0xe   : > { %p497_p5 = pnand %p496_p4, %p809_p1  ;;  %s169_s5 = sshll.u32 %s754_s4, 4  ;;  %s170_s5 = int_to_ptr.vmem [resolvable:$true] %s169_s5 }
   0xf   : > { %s32_s6 = sadd.s32 1, %s745_s16  ;;  %s466_s7 = sadd.s32 4294967294, %s749_s17  }
  0x10   : > { %499 = dma.hbm_to_vmem [thread:$0]  (!%p497_p5), %s153_s22, 512, %s155_s25, [#allocation6], %s752_s29, %s752_s29, %s753_s30  }
  0x11   : > { %502 = dma.hbm_to_vmem [thread:$0]  (!%p497_p5), %s168_s28, 64, %s170_s5, [#allocation6]  }
  0x12   : > { %p34_p7 = scmp.ge.s32.totalorder %s32_s6, 2  ;;  %s41_s8 = sadd.s32 1, %s737_s14 }
  0x13   : > { %p48_p8 = scmp.ne.s32.totalorder %s737_s14, %s733_s13  ;;  %p49_p9 = scmp.eq.s32.totalorder %s749_s17, 0 }
  0x14   : > { %s943_s6 = smov (%p34_p7, %s32_s6), 0  ;;  %p54_p10 = scmp.ne.s32.totalorder %s733_s13, %s729_s12 }
  0x15   : > { %s36_s9 = ssub.s32 %s745_s16, %s943_s6  ;;  %p125_p11 = scmp.eq.s32.totalorder %s465_s18, 1 }
  0x16   : > { %p39_p12 = scmp.eq.s32.totalorder %s36_s9, 0  ;;  %p845_p13 = por %p809_p1, %p54_p10 }
  0x17   : > { %p849_p0 = por %p125_p11, %p48_p8  ;;  %p131_p2 = scmp.eq.s32.totalorder %s466_s7, 1 }
  0x18   : > { %s854_s20 = scalar_select %p39_p12, %s737_s14, %s41_s8  }
  0x19   : > { %p50_p4 = por %p49_p9, %p48_p8  ;;  %p856_p5 = por %p131_p2, %p54_p10 }
  0x1a   : > { %s180_s22 = sand.u32 1, %s737_s14   ;;  %s472_s18 = sshll.u32 %s745_s16, 3 }
  0x1b   : > { %p513_p7 = scmp.lt.s32.totalorder %s749_s17, 2  ;;  %s471_s24 = sshll.u32 %s180_s22, 3 }
  0x1c   : > { %s189_s27 = scalar_lea.hbm %s928_s0, %s472_s18  ;;  %s184_s29 = scalar_lea.vmem [#allocation2], %s471_s24 }
  0x1d   : > { %s191_s28 = sshll.u32 %s189_s27, 4  ;;  %s193_s30 = sshll.u32 %s184_s29, 4  ;;  %s192_s28 = int_to_ptr.hbm [resolvable:$true] %s191_s28  ;;  %s194_s30 = int_to_ptr.vmem [resolvable:$true] %s193_s30 }
  0x1e   : > { %p504_p11 = pnand %p513_p7, %p50_p4  ;;  %s181_s4 = scalar_lea.sflag [#allocation3], %s180_s22 }
  0x1f   : > { %202 = sbr.rel (%p817_p3) target bundleno = 496 (0x1f0), region = 32  ;;  %s869_s5 = sand.u32 (!%p817_p3), 1, %s733_s13  }
  0x20   : > { %506 = dma.hbm_to_vmem [thread:$0]  (!%p504_p11), %s192_s28, 128, %s194_s30, %s181_s4  }
  0x21   : > { %s474_s7 = sshll.u32 (!%p817_p3), %s869_s5, 3  ;;  %s205_s8 = scalar_lea.sflag (!%p817_p3), [#allocation3], %s869_s5 }
  0x22   : > { %s208_s9 = scalar_lea.vmem (!%p817_p3), [#allocation2], %s474_s7 }
  0x24   : > { %716 = dma.done.wait (%p845_p13), %s205_s8, 128  }
  0x25   : > { %718 = vsyncadd (%p845_p13), %s205_s8, 4294967168 }
  0x26   : > { %720 = dma.done.wait (%p809_p1), [#allocation6], 576  }
  0x27   : > { %722 = vsyncadd (%p809_p1), [#allocation6], 4294966720  ;;  %v247_v0 = vld [vmem:[#allocation5 + $0x18] sm:$0xff]  ;;  %v246_v1 = vld [vmem:[#allocation5 + $0x10] sm:$0xff]  ;;  %vm250_vm0 = vcmask 261120   ;;  %v322_v48 = vlaneseq  ;;  %s481_s19 = sshll.u32 %s741_s15, 3 }
  0x28   : > { %266 = vmatpush.msra.mxu0 %v247_v0  ;;  %v245_v2 = vld [vmem:[#allocation5 + $0x8] sm:$0xff]  ;;  %v244_v3 = vld [vmem:[#allocation5] sm:$0xff]  ;;  %v243_v4 = vld [vmem:[%s208_s9] sm:$0xff]  ;;  %s360_s22 = scalar_lea.hbm %s931_s3, %s481_s19  ;;  %s241_s18 = scalar_lea.vmem [#allocation8], %s474_s7 }
  0x29   : > { %v883_v5 = vld [vmem:[#allocation7] sm:$0x7]  ;;  %v323_v50 = vand.u32 127, %v322_v48  ;;  %s362_s24 = sshll.u32 %s241_s18, 4  ;;  %s364_s25 = sshll.u32 %s360_s22, 4  ;;  %s363_s24 = int_to_ptr.vmem [resolvable:$true] %s362_s24  ;;  %s365_s25 = int_to_ptr.hbm [resolvable:$true] %s364_s25 }
  0x2a   : > { %267 = vmatpush.msra.mxu0 %v246_v1  ;;  %v249_v6 = vperm.slane %v883_v5, 0  ;;  %v344_v0 = vperm.slane %v883_v5, 1  ;;  %s350_s15 = scalar_lea.sflag [#allocation4], %s869_s5  ;;  %s677_s26 = sshra.s32 %s365_s25, 4  ;;  %s678_s26 = int_to_ptr.hbm [resolvable:$true] %s677_s26 }
  0x2b   : > { %vm324_vm5 = vcmp.lt.s32.totalorder %v323_v50, 32  ;;  %s679_s27 = scalar_lea.hbm %s678_s26, 8  ;;  %s683_s30 = scalar_lea.hbm %s931_s3, 16 }
  0x2c   : > { %268 = vmatpush.msra.mxu0 %v245_v2  ;;  %v346_v2 = vperm.slane %v883_v5, 2  ;;  %p680_p1 = scmp.ne.s32.totalorder %s678_s26, %s679_s27  ;;  %p684_p9 = scmp.lt.s32.totalorder %s678_s26, %s931_s3 }
  0x2d   : > { %p685_p10 = scmp.lt.s32.totalorder %s683_s30, %s679_s27 }
  0x2e   : > { %269 = vmatpush.msra.mxu0 %v244_v3  ;;  %p681_p3 = pnand %p680_p1, %p849_p0 }
  0x2f   : > { %478 = vmatmul.msk.f32.vlgmr.msra.gmra.mxu0 %vm250_vm0, %v243_v4  ;;  %p686_p12 = por %p685_p10, %p684_p9 }
  0x30   : > { %p682_p8 = pneg %p681_p3 }
  0x32   : > { %p687_p13 = pnand %p686_p12, %p682_p8 }
  0xac   : > { %v271_v7 = vpop.f32.mrf.mxu0 }
  0xad   : > { %v272_v8 = vadd.f32 %v271_v7, %v249_v6 }
  0xaf   : > { %v275_v9 = vmul.f32 0.70710677, %v272_v8  ;;  %v274_v45 = vmul.f32 0.5, %v272_v8 }
  0xb1   : > { %v276_v10 = vmul.f32 %v275_v9, %v275_v9 }
  0xb3   : > { %v277_v11 = vmin.f32 %v276_v10, 16.0 }
  0xb5   : > { %v278_v12 = vmul.f32 2.1237322e-06, %v277_v11  ;;  %v289_v13 = vmul.f32 3.8918573e-05, %v277_v11 }
  0xb7   : > { %v279_v14 = vadd.f32 0.00028619796, %v278_v12  ;;  %v290_v15 = vadd.f32 0.001143296, %v289_v13 }
  0xb9   : > { %v280_v16 = vmul.f32 %v279_v14, %v277_v11  ;;  %v291_v17 = vmul.f32 %v290_v15, %v277_v11 }
  0xbb   : > { %v292_v18 = vadd.f32 0.014752088, %v291_v17  ;;  %v281_v19 = vadd.f32 0.0036580483, %v280_v16 }
  0xbd   : > { %v293_v20 = vmul.f32 %v292_v18, %v277_v11  ;;  %v282_v22 = vmul.f32 %v281_v19, %v277_v11 }
  0xbf   : > { %v294_v21 = vadd.f32 0.112945676, %v293_v20  ;;  %v283_v25 = vadd.f32 0.05243302, %v282_v22 }
  0xc1   : > { %v295_v23 = vmul.f32 %v294_v21, %v277_v11  ;;  %v284_v28 = vmul.f32 %v283_v25, %v277_v11 }
  0xc3   : > { %v296_v24 = vadd.f32 0.4994258, %v295_v23  ;;  %v285_v29 = vadd.f32 0.18741608, %v284_v28 }
  0xc5   : > { %v297_v26 = vmul.f32 %v296_v24, %v277_v11  ;;  %v286_v31 = vmul.f32 %v285_v29, %v277_v11 }
  0xc7   : > { %v298_v27 = vadd.f32 1.0, %v297_v26  ;;  %v287_v35 = vadd.f32 1.1283791, %v286_v31 }
  0xc9   : > { %569 = vrcp.f32 %v298_v27  ;;  %v310_v34 = vand.u32 2147483648, %v298_v27  ;;  %v308_v37 = vand.u32 2147483647, %v298_v27  ;;  %vm304_vm2 = vweird.f32 %v298_v27 }
  0xca   : > { %v288_v40 = vmul.f32 %v287_v35, %v275_v9 }
  0xcb   : > { %v311_v39 = vor.u32 1.1754944e-38, %v310_v34  ;;  %vm309_vm4 = vcmp.eq.f32.partialorder %v308_v37, 8.507059e+37 }
  0xcf   : > { %v570_v30 = vpop.eup %569 }
  0xd0   : > { %v300_v32 = vmul.f32 %v570_v30, %v298_v27  ;;  %vm305_vm1 = vweird.f32 %v570_v30 }
  0xd1   : > { %vm306_vm3 = vmor %vm304_vm2, %vm305_vm1 }
  0xd2   : > { %v301_v33 = vsub.f32 1.0, %v300_v32 }
  0xd4   : > { %v302_v36 = vmul.f32 %v570_v30, %v301_v33 }
  0xd6   : > { %v303_v38 = vadd.f32 %v570_v30, %v302_v36 }
  0xd8   : > { %v307_v41 = vsel %vm306_vm3, %v570_v30, %v303_v38 }
  0xd9   : > { %v312_v42 = vsel %vm309_vm4, %v311_v39, %v307_v41 }
  0xda   : > { %v313_v43 = vmul.f32 %v312_v42, %v288_v40 }
  0xdc   : > { %v479_v44 = vclamps-f32 %v313_v43, 1.0 }
  0xde   : > { %v316_v46 = vadd.f32 1.0, %v479_v44 }
  0xe0   : > { %v317_v47 = vmul.f32 %v316_v46, %v274_v45 }
  0xe2   : > { %318 = vadd.xlane.f32.xlu0 %v317_v47 }
 0x155   : > { %v319_v49 = vpop.xlane.xlu0 %318 }
 0x156   : > { %v320_v51 = vmul.f32 0.03125, %v319_v49 }
 0x158   : > { %v321_v52 = vsub.f32 %v317_v47, %v320_v51 }
 0x15a   : > { %v325_v53 = vmul.f32 %v321_v52, %v321_v52 }
 0x15c   : > { %v328_v54 = vsel %vm324_vm5, %v325_v53, 0.0 }
 0x15d   : > { %329 = vadd.xlane.f32.xlu0 %v328_v54 }
 0x1d0   : > { %v330_v55 = vpop.xlane.xlu0 %329 }
 0x1d1   : > { %v331_v56 = vmul.f32 0.03125, %v330_v55 }
 0x1d3   : > { %v332_v57 = vadd.f32 1e-05, %v331_v56 }
 0x1d5   : > { %571 = vrsqrt.f32 %v332_v57  ;;  %vm339_vm7 = vweird.f32 %v332_v57 }
 0x1db   : > { %v572_v58 = vpop.eup %571 }
 0x1dc   : > { %v334_v59 = vmul.f32 %v572_v58, %v332_v57  ;;  %vm340_vm6 = vweird.f32 %v572_v58 }
 0x1dd   : > { %vm341_vm8 = vmor %vm339_vm7, %vm340_vm6 }
 0x1de   : > { %v335_v60 = vmul.f32 %v572_v58, %v334_v59 }
 0x1e0   : > { %v336_v61 = vmul.f32 0.5, %v335_v60 }
 0x1e2   : > { %v337_v62 = vsub.f32 1.5, %v336_v61 }
 0x1e4   : > { %v338_v63 = vmul.f32 %v572_v58, %v337_v62 }
 0x1e6   : > { %v342_v1 = vsel %vm341_vm8, %v572_v58, %v338_v63 }
 0x1e7   : > { %v343_v3 = vmul.f32 %v342_v1, %v321_v52 }
 0x1e9   : > { %v345_v4 = vmul.f32 %v344_v0, %v343_v3 }
 0x1eb   : > { %v347_v6 = vadd.f32 %v346_v2, %v345_v4 }
 0x1ed   : > { %348 = vst [vmem:[%s241_s18] sm:$0xff] %v347_v6 }
 0x1ee   : > { %690 = shalt.err (!%p687_p13)
}
 0x1ef   : > { %494 = dma.vmem_to_hbm [thread:$0]  (%p849_p0), %s363_s24, 128, %s365_s25, %s350_s15  }
 0x1f0 PF: > { %s376_s5 = sand.u32 1, %s729_s12   ;;  %p508_p2 = pnand %p470_p6, %p856_p5 }
 0x1f1   : > { %s377_s8 = scalar_lea.sflag [#allocation4], %s376_s5 }
 0x1f2   : > { %p509_p4 = pneg %p508_p2 }
 0x1f4   : > { %724 = dma.done.wait (%p509_p4), %s377_s8, 128  }
 0x1f5   : > { %726 = vsyncadd (%p509_p4), %s377_s8, 4294967168  ;;  %s20_s17 = sadd.s32 1, %s749_s17   ;;  %s937_s12 = smov %s733_s13 }
 0x1f6   : > { %p17_p7 = scmp.ge.s32.totalorder %s20_s17, 4   ;;  %s938_s13 = smov %s737_s14 }
 0x1f7   : > { %s939_s14 = smov %s854_s20  ;;  %s940_s15 = smov %s745_s16 }
 0x1f8   : > { %s941_s16 = smov %s943_s6  ;;  %19 = sbr.rel (!%p17_p7) target bundleno = 7 (0x7), region = 86 }
 0x1fd   :  { %383 = vsyncpa [#allocation3], 1 }
 0x1fe   :  { %385 = vsyncpa [#allocation3 + $0x1], 1 }
 0x1ff   :  { %386 = vsyncpa [#allocation6], 1 }
 0x200   :  { %387 = vsyncpa [#allocation4], 1 }
 0x201   :  { %389 = vsyncpa [#allocation4 + $0x1], 1 }

</bundles_post_ra>
